<compile_context>
chip_gen: v5e
topology: v5e:2x2
jax: 0.10.0
libtpu: 0.0.40
codegen_flags: <defaults>
</compile_context>

<pallas_src>
import jax
import jax.numpy as jnp
from jax.experimental import pallas as pl
from jax.experimental.pallas import tpu as pltpu


def linear_kernel(xt_ref, w_ref, b_ref, ot_ref):
    # out_t = W @ x_t + b, computed lane-dense over the batch tile.
    OUT, IN = w_ref.shape           # (3, 4), static
    TB = xt_ref.shape[-1]           # batch tile width (multiple of 128)

    w = w_ref[...].astype(jnp.float32)   # (OUT, IN)  tiny, VMEM-resident
    b = b_ref[...].astype(jnp.float32)   # (OUT, 1)

    # Bias broadcast across lanes once per tile.
    acc = jnp.broadcast_to(b, (OUT, TB))

    # Static K=4 unroll: pure VPU broadcast-multiply-add.
    #  - x row k broadcast across sublanes (cheap, no XLU lane shuffle of the
    #    big operand),
    #  - w column k broadcast across lanes (tiny, 3 values, 4x per tile).
    for k in range(IN):
        xk = jnp.broadcast_to(
            xt_ref[k:k + 1, :].astype(jnp.float32), (OUT, TB))  # sublane bcast
        wk = jnp.broadcast_to(w[:, k:k + 1], (OUT, TB))          # lane bcast
        acc = acc + wk * xk

    ot_ref[...] = acc.astype(ot_ref.dtype)


def multiclass_forward(x, weight, bias, *, tile_b=16384):
    """nn.Linear(IN, OUT) forward: x @ weight.T + bias (Pallas TPU kernel)."""
    B, IN = x.shape
    OUT = weight.shape[0]

    # Lane-dense batch tile: multiple of 128, capped at the (padded) batch.
    TB = min(tile_b, pl.cdiv(B, 128) * 128)
    B_pad = pl.cdiv(B, TB) * TB     # ragged tail handled by zero-padding

    # Layout plumbing in the XLA wrapper (free relative to the kernel):
    # batch on lanes, weight kept in PyTorch (OUT, IN) layout, bias as a
    # 2-D column so the kernel's bias broadcast is a plain lane broadcast.
    xt = jnp.zeros((IN, B_pad), x.dtype).at[:, :B].set(x.T)   # (IN, B_pad)
    b2d = bias.reshape(OUT, 1)                                # (OUT, 1)

    out_t = pl.pallas_call(
        linear_kernel,
        out_shape=jax.ShapeDtypeStruct((OUT, B_pad), x.dtype),
        grid=(B_pad // TB,),
        in_specs=[
            pl.BlockSpec((IN, TB), lambda i: (0, i)),     # x tile, lane-dense
            pl.BlockSpec((OUT, IN), lambda i: (0, 0)),    # whole weight
            pl.BlockSpec((OUT, 1), lambda i: (0, 0)),     # whole bias
        ],
        out_specs=pl.BlockSpec((OUT, TB), lambda i: (0, i)),
        compiler_params=pltpu.CompilerParams(
            # Batch tiles are independent -> shards across v7x's 2 TensorCores.
            dimension_semantics=("parallel",),
        ),
    )(xt, weight, b2d)

    # Back to PyTorch output layout (B, OUT); drop batch padding.
    return out_t[:, :B].T


if __name__ == "__main__":
    key = jax.random.PRNGKey(0)
    kx, kw, kb = jax.random.split(key, 3)

    B, IN, OUT = 8, 4, 3
    x = jax.random.normal(kx, (B, IN), dtype=jnp.float32)

    # Deterministic parameter init (PyTorch Linear default: U(-1/sqrt(in), 1/sqrt(in)))
    bound = 1.0 / jnp.sqrt(jnp.float32(IN))
    weight = jax.random.uniform(kw, (OUT, IN), jnp.float32, -bound, bound)
    bias = jax.random.uniform(kb, (OUT,), jnp.float32, -bound, bound)

    out = multiclass_forward(x, weight, bias)
    jax.block_until_ready(out)

    # Cross-check against plain JAX reference (exact nn.Linear semantics).
    ref = x @ weight.T + bias
    assert out.shape == (B, OUT)
    assert jnp.allclose(out, ref, atol=1e-5, rtol=1e-5)

    print("KERNEL_OK")
</pallas_src>

<mosaic_0001>
module attributes {stable_mosaic.version = 11 : i64} {
  func.func @linear_kernel(%arg0: i32, %arg1: memref<4x128xf32, #tpu.memory_space<vmem>>, %arg2: memref<3x4xf32, #tpu.memory_space<vmem>>, %arg3: memref<3x1xf32, #tpu.memory_space<vmem>>, %arg4: memref<3x128xf32, #tpu.memory_space<vmem>>) attributes {dimension_semantics = [#tpu.dimension_semantics<parallel>], iteration_bounds = array<i64: 1>, scalar_prefetch = 0 : i64, scratch_operands = 0 : i64, tpu.core_type = #tpu.core_type<tc>, window_params = [{transform_indices = @transform_0, window_bounds = array<i64: 4, 128>}, {pipeline_mode = #tpu.pipeline_mode<synchronous>, transform_indices = @transform_1, window_bounds = array<i64: 3, 4>}, {pipeline_mode = #tpu.pipeline_mode<synchronous>, transform_indices = @transform_2, window_bounds = array<i64: 3, 1>}, {transform_indices = @transform_3, window_bounds = array<i64: 3, 128>}]} {
    %c0 = arith.constant 0 : index
    %c0_0 = arith.constant 0 : index
    %0 = vector.load %arg2[%c0, %c0_0] : memref<3x4xf32, #tpu.memory_space<vmem>>, vector<3x4xf32>
    %c0_1 = arith.constant 0 : index
    %c0_2 = arith.constant 0 : index
    %1 = vector.load %arg3[%c0_1, %c0_2] : memref<3x1xf32, #tpu.memory_space<vmem>>, vector<3x1xf32>
    %2 = vector.shape_cast %1 : vector<3x1xf32> to vector<3x1xf32>
    %3 = vector.broadcast %2 : vector<3x1xf32> to vector<3x128xf32>
    %c0_3 = arith.constant 0 : index
    %c0_4 = arith.constant 0 : index
    %4 = vector.load %arg1[%c0_3, %c0_4] : memref<4x128xf32, #tpu.memory_space<vmem>>, vector<1x128xf32>
    %5 = vector.shape_cast %4 : vector<1x128xf32> to vector<1x128xf32>
    %6 = vector.broadcast %5 : vector<1x128xf32> to vector<3x128xf32>
    %7 = vector.extract_strided_slice %0 {offsets = [0, 0], sizes = [3, 1], strides = [1, 1]} : vector<3x4xf32> to vector<3x1xf32>
    %8 = vector.shape_cast %7 : vector<3x1xf32> to vector<3x1xf32>
    %9 = vector.broadcast %8 : vector<3x1xf32> to vector<3x128xf32>
    %10 = arith.mulf %9, %6 : vector<3x128xf32>
    %11 = arith.addf %3, %10 : vector<3x128xf32>
    %c1 = arith.constant 1 : index
    %c0_5 = arith.constant 0 : index
    %12 = vector.load %arg1[%c1, %c0_5] : memref<4x128xf32, #tpu.memory_space<vmem>>, vector<1x128xf32>
    %13 = vector.shape_cast %12 : vector<1x128xf32> to vector<1x128xf32>
    %14 = vector.broadcast %13 : vector<1x128xf32> to vector<3x128xf32>
    %15 = vector.extract_strided_slice %0 {offsets = [0, 1], sizes = [3, 1], strides = [1, 1]} : vector<3x4xf32> to vector<3x1xf32>
    %16 = vector.shape_cast %15 : vector<3x1xf32> to vector<3x1xf32>
    %17 = vector.broadcast %16 : vector<3x1xf32> to vector<3x128xf32>
    %18 = arith.mulf %17, %14 : vector<3x128xf32>
    %19 = arith.addf %11, %18 : vector<3x128xf32>
    %c2 = arith.constant 2 : index
    %c0_6 = arith.constant 0 : index
    %20 = vector.load %arg1[%c2, %c0_6] : memref<4x128xf32, #tpu.memory_space<vmem>>, vector<1x128xf32>
    %21 = vector.shape_cast %20 : vector<1x128xf32> to vector<1x128xf32>
    %22 = vector.broadcast %21 : vector<1x128xf32> to vector<3x128xf32>
    %23 = vector.extract_strided_slice %0 {offsets = [0, 2], sizes = [3, 1], strides = [1, 1]} : vector<3x4xf32> to vector<3x1xf32>
    %24 = vector.shape_cast %23 : vector<3x1xf32> to vector<3x1xf32>
    %25 = vector.broadcast %24 : vector<3x1xf32> to vector<3x128xf32>
    %26 = arith.mulf %25, %22 : vector<3x128xf32>
    %27 = arith.addf %19, %26 : vector<3x128xf32>
    %c3 = arith.constant 3 : index
    %c0_7 = arith.constant 0 : index
    %28 = vector.load %arg1[%c3, %c0_7] : memref<4x128xf32, #tpu.memory_space<vmem>>, vector<1x128xf32>
    %29 = vector.shape_cast %28 : vector<1x128xf32> to vector<1x128xf32>
    %30 = vector.broadcast %29 : vector<1x128xf32> to vector<3x128xf32>
    %31 = vector.extract_strided_slice %0 {offsets = [0, 3], sizes = [3, 1], strides = [1, 1]} : vector<3x4xf32> to vector<3x1xf32>
    %32 = vector.shape_cast %31 : vector<3x1xf32> to vector<3x1xf32>
    %33 = vector.broadcast %32 : vector<3x1xf32> to vector<3x128xf32>
    %34 = arith.mulf %33, %30 : vector<3x128xf32>
    %35 = arith.addf %27, %34 : vector<3x128xf32>
    %c0_8 = arith.constant 0 : index
    %c0_9 = arith.constant 0 : index
    %36 = vector.load %arg4[%c0_8, %c0_9] : memref<3x128xf32, #tpu.memory_space<vmem>>, vector<3x128xf32>
    tpu.vector_store %arg4[%c0_8, %c0_9], %35 {strides = array<i32>} : memref<3x128xf32, #tpu.memory_space<vmem>>, vector<3x128xf32>,
    return
  }
  func.func @transform_0(%arg0: i32) -> (i32, i32) {
    %c0_i32 = arith.constant 0 : i32
    %c0_i32_0 = arith.constant 0 : i32
    return %c0_i32, %arg0 : i32, i32
  }
  func.func @transform_1(%arg0: i32) -> (i32, i32) {
    %c0_i32 = arith.constant 0 : i32
    %c0_i32_0 = arith.constant 0 : i32
    %c0_i32_1 = arith.constant 0 : i32
    return %c0_i32, %c0_i32_0 : i32, i32
  }
  func.func @transform_2(%arg0: i32) -> (i32, i32) {
    %c0_i32 = arith.constant 0 : i32
    %c0_i32_0 = arith.constant 0 : i32
    %c0_i32_1 = arith.constant 0 : i32
    return %c0_i32, %c0_i32_0 : i32, i32
  }
  func.func @transform_3(%arg0: i32) -> (i32, i32) {
    %c0_i32 = arith.constant 0 : i32
    %c0_i32_0 = arith.constant 0 : i32
    return %c0_i32, %arg0 : i32, i32
  }
}

</mosaic_0001>

<bundles_post_ra>
// kernel: tpu_custom_call.1
= control target key start
LH: loop header
LB: loop body
LE: loop exit
PB: predicated region body
PF: predicated region fallthrough
CT: control target
= control target key end

     0   :  { %8 = vsyncpa [#allocation3], 0  ;;  %s201_s0 = inlined_call_operand.vmem [shape: f32[4,128], index: 0, kind: input, shape index: {}]   ;;  %s202_s1 = inlined_call_operand.hbm [shape: f32[3,4], index: 1, kind: input, shape index: {}]   ;;  %s203_s2 = inlined_call_operand.vmem [shape: f32[3,1], index: 2, kind: input, shape index: {}]   ;;  %s204_s3 = inlined_call_operand.hbm [shape: f32[3,128], index: 3, kind: output, shape index: {}]  }
   0x1   :  { %9 = vsyncpa [#allocation4], 0  ;;  %s17_s14 = sshll.u32 %s202_s1, 4  ;;  %s154_s15 = smov [#allocation2]   ;;  %s18_s14 = int_to_ptr.hbm [resolvable:$true] %s17_s14 }
   0x2   :  { %s19_s16 = sshll.u32 %s154_s15, 4  ;;  %s20_s16 = int_to_ptr.vmem [resolvable:$true] %s19_s16 }
   0x3   :  { %22 = dma.hbm_to_vmem [thread:$0]  %s18_s14, 64, %s20_s16, [#allocation3]  }
   0x4   :  { %150 = dma.done.wait [#allocation3], 64  }
   0x5   :  { %151 = vsyncadd [#allocation3], 4294967232  ;;  %v155_v0 = vmov 0   ;;  %v156_v1 = vmov 1   ;;  %v157_v2 = vmov 3   ;;  %v158_v5 = vmov 2  }
   0x6   :  { %93 = vset.pattern.permute.xlu0 %v155_v0  ;;  %94 = vset.pattern.permute.xlu1 %v156_v1  ;;  %v29_v3 = vld [vmem:[#allocation2] sm:$0x7]  ;;  %v101_v12 = vld [vmem:[%s201_s0 + $0x3] ss:$0 sm:$0xff]  ;;  %s159_s25 = smov [#allocation5]   ;;  %s77_s29 = sshll.u32 %s204_s3, 4  ;;  %s78_s29 = int_to_ptr.hbm [resolvable:$true] %s77_s29 }
   0x7   :  { %96 = vset.pattern.permute.xlu2 %v157_v2  ;;  %40 = vperm.xlu0 %93, %v29_v3   ;;  %v30_v4 = vld [vmem:[%s203_s2] sm:$0x7]  ;;  %s75_s26 = sshll.u32 %s159_s25, 4  ;;  %s76_s26 = int_to_ptr.vmem [resolvable:$true] %s75_s26 }
   0x8   :  { %48 = vperm.xlu1 %94, %v29_v3   ;;  %64 = vperm.xlu2 %96, %v29_v3   ;;  %v98_v8 = vld [vmem:[%s201_s0] ss:$0 sm:$0xff]  ;;  %v99_v9 = vld [vmem:[%s201_s0 + $0x1] ss:$0 sm:$0xff]  ;;  %v100_v10 = vld [vmem:[%s201_s0 + $0x2] ss:$0 sm:$0xff] }
   0xf   :  { %33 = vperm.xlu0 %93, %v30_v4  }
  0x10   :  { %95 = vset.pattern.permute.xlu1 %v158_v5 }
  0x11   :  { %56 = vperm.xlu1 %95, %v29_v3  }
  0x17   :  { %97 = vset.pattern.permute.xlu0 %v157_v2 }
  0x62   :  { %v65_v14 = vpop.permute.xlu2 %64 }
  0x63   :  { %v67_v20 = vmul.f32 %v101_v12, %v65_v14 }
  0x79   :  { %v41_v6 = vpop.permute.xlu0 %40 }
  0x7a   :  { %v49_v7 = vpop.permute.xlu1 %48  ;;  %v43_v11 = vmul.f32 %v98_v8, %v41_v6 }
  0x7b   :  { %v51_v15 = vmul.f32 %v99_v9, %v49_v7 }
  0x81   :  { %v34_v13 = vpop.permute.xlu0 %33 }
  0x82   :  { %v44_v16 = vadd.f32 %v43_v11, %v34_v13 }
  0x83   :  { %v57_v17 = vpop.permute.xlu1 %56 }
  0x84   :  { %v59_v18 = vmul.f32 %v100_v10, %v57_v17  ;;  %v52_v19 = vadd.f32 %v51_v15, %v44_v16 }
  0x86   :  { %v60_v21 = vadd.f32 %v59_v18, %v52_v19 }
  0x88   :  { %v68_v22 = vadd.f32 %v67_v20, %v60_v21 }
  0x8a   :  { %69 = vst [vmem:[#allocation5] sm:$0x7] %v68_v22 }
  0x8b   :  { %80 = dma.vmem_to_hbm [thread:$0]  %s76_s26, 64, %s78_s29, [#allocation4]  }
  0x8c   :  { %152 = dma.done.wait [#allocation4], 64  }
  0x8d   :  { %153 = vsyncadd [#allocation4], 4294967232 }
  0x8e   :  { %85 = vsyncpa [#allocation3], 1 }
  0x8f   :  { %86 = vsyncpa [#allocation4], 1 }

</bundles_post_ra>
